<compile_context>
chip_gen: v6e
topology: v6e:2x2x1
jax: 0.10.0
libtpu: 0.0.40
codegen_flags: <defaults>
</compile_context>

<pallas_src>
import functools

import jax
import jax.numpy as jnp
from jax.experimental import pallas as pl
from jax.experimental.pallas import tpu as pltpu

EPS = 1e-5
LANE = 128


def _round_up(n, m):
    return ((n + m - 1) // m) * m


def _pad_axis(a, target, axis):
    pad = target - a.shape[axis]
    if pad <= 0:
        return a
    widths = [(0, 0)] * a.ndim
    widths[axis] = (0, pad)
    return jnp.pad(a, widths)


# ----------------------------------------------------------------------------
# Fused kernel: bottom Linear + every (BN -> act -> FC) block, in one body.
# ----------------------------------------------------------------------------
def _fused_forward_kernel(*refs, num_blocks, use_bn, use_act, mxu_dtype):
    """refs layout:
         x, bottom_w, bottom_b,
         then per block: [gamma, beta (if use_bn)], w, b,
         out_ref (last).
    All weights/biases are pre-padded to 128-lane multiples and already (1, F)
    shaped for the 2-D row vectors.  The activation `h` lives entirely on-chip.
    """
    out_ref = refs[-1]
    refs = refs[:-1]
    idx = 0

    def nxt():
        nonlocal idx
        r = refs[idx]
        idx += 1
        return r

    x = nxt()[...]
    bw = nxt()[...]
    bb = nxt()[...]
    # Bottom model: Linear.  bf16 operands on the MXU, f32 accumulation.
    h = jnp.dot(x.astype(mxu_dtype), bw.astype(mxu_dtype),
                preferred_element_type=jnp.float32) + bb

    for _ in range(num_blocks):
        if use_bn:
            g = nxt()[...]
            be = nxt()[...]
            # BatchNorm1d training mode, single pass over h:
            # mean and E[x^2] -> biased variance.
            mean = jnp.mean(h, axis=0, keepdims=True)
            mean_sq = jnp.mean(h * h, axis=0, keepdims=True)
            var = jnp.maximum(mean_sq - mean * mean, 0.0)
            h = (h - mean) * jax.lax.rsqrt(var + EPS)
            h = h * g + be
        if use_act:
            h = jnp.maximum(h, 0.0)  # ReLU (f32 on the VPU)
        w = nxt()[...]
        b = nxt()[...]
        h = jnp.dot(h.astype(mxu_dtype), w.astype(mxu_dtype),
                    preferred_element_type=jnp.float32) + b

    out_ref[...] = h


# ----------------------------------------------------------------------------
# Wrapper: pad to lane-dense shapes, build the operand list, one pallas_call.
# ----------------------------------------------------------------------------
def bottom_model_plus_forward(x, params, *, num_layer=1, use_bn=True,
                              activation_func_type="ReLU",
                              mxu_dtype=jnp.bfloat16):
    if activation_func_type not in ("ReLU", "None"):
        # TODO(synk): 'Sigmoid' activation variant not wired into the fused kernel.
        raise NotImplementedError("only ReLU / None activations are supported")
    use_act = activation_func_type == "ReLU"

    B, Fin = x.shape
    S = params["bottom_w"].shape[1]
    C = params["fc_final_w"].shape[1]
    Fin_p = _round_up(Fin, LANE)
    S_p = _round_up(S, LANE)
    C_p = _round_up(C, LANE)

    # Zero padding is exact: padded input columns hit zero-padded weight rows,
    # padded BN columns stay exactly 0 (gamma_pad = beta_pad = 0), and padded
    # output columns are sliced off at the end.
    inputs = [
        _pad_axis(x.astype(jnp.float32), Fin_p, 1),
        _pad_axis(_pad_axis(params["bottom_w"], Fin_p, 0), S_p, 1),
        _pad_axis(params["bottom_b"].reshape(1, S), S_p, 1),
    ]

    num_blocks = 0

    def add_block(g, be, w, b, fin, fout, fin_p, fout_p):
        nonlocal num_blocks
        if use_bn:
            inputs.append(_pad_axis(g.reshape(1, fin), fin_p, 1))
            inputs.append(_pad_axis(be.reshape(1, fin), fin_p, 1))
        inputs.append(_pad_axis(_pad_axis(w, fin_p, 0), fout_p, 1))
        inputs.append(_pad_axis(b.reshape(1, fout), fout_p, 1))
        num_blocks += 1

    # blocks 1 .. num_layer-1 (fc_1 .. fc_4), then the final block.
    for i in range(1, min(num_layer, 5)):
        add_block(params[f"bn_{i}_g"], params[f"bn_{i}_b"],
                  params[f"fc_{i}_w"], params[f"fc_{i}_b"], S, S, S_p, S_p)
    add_block(params["bn_final_g"], params["bn_final_b"],
              params["fc_final_w"], params["fc_final_b"], S, C, S_p, C_p)

    kernel = functools.partial(
        _fused_forward_kernel, num_blocks=num_blocks, use_bn=use_bn,
        use_act=use_act, mxu_dtype=mxu_dtype)

    # Whole-array VMEM operands, no grid (single-shot kernel, no pipeline
    # machinery).  NOTE(v7x): for larger S the resident-weight footprint must
    # be budgeted against 64 MiB physical VMEM (vs 128 MiB on v5e/v6e).
    vmem_spec = pl.BlockSpec(memory_space=pltpu.MemorySpace.VMEM)
    out_padded = pl.pallas_call(
        kernel,
        out_shape=jax.ShapeDtypeStruct((B, C_p), jnp.float32),
        in_specs=[vmem_spec] * len(inputs),
        out_specs=vmem_spec,
    )(*inputs)
    return out_padded[:, :C]


# ----------------------------------------------------------------------------
# Parameter init mirroring the PyTorch __init__ (fc weights = ones, BN gamma=1
# beta=0); the bottom model is an arbitrary module in PyTorch, modeled here as
# a Linear(in_features -> size_bottom_out) with random weights.
# ----------------------------------------------------------------------------
def init_params(key, in_features, size_bottom_out, num_classes):
    keys = jax.random.split(key, 8)
    S = size_bottom_out
    params = {
        "bottom_w": jax.random.normal(keys[0], (in_features, S), jnp.float32) * 0.1,
        "bottom_b": jax.random.normal(keys[1], (S,), jnp.float32) * 0.1,
        "fc_final_w": jnp.ones((S, num_classes), jnp.float32),
        "fc_final_b": jax.random.normal(keys[2], (num_classes,), jnp.float32) * 0.1,
        "bn_final_g": jnp.ones((S,), jnp.float32),
        "bn_final_b": jnp.zeros((S,), jnp.float32),
    }
    for i in range(1, 5):
        params[f"fc_{i}_w"] = jnp.ones((S, S), jnp.float32)
        params[f"fc_{i}_b"] = jax.random.normal(keys[2 + i], (S,), jnp.float32) * 0.1
        params[f"bn_{i}_g"] = jnp.ones((S,), jnp.float32)
        params[f"bn_{i}_b"] = jnp.zeros((S,), jnp.float32)
    return params


# ----------------------------------------------------------------------------
# Pure-JAX reference mirroring the kernel's numerics (bf16 MXU operands, f32
# accumulation, f32 training-mode BatchNorm1d / ReLU).  Mathematically equal to
# the PyTorch forward.
# ----------------------------------------------------------------------------
def reference_forward(x, params, *, num_layer=1, use_bn=True,
                      activation_func_type="ReLU", mxu_dtype=jnp.bfloat16):
    use_act = activation_func_type == "ReLU"

    def mm(a, w, b):
        return jnp.dot(a.astype(mxu_dtype), w.astype(mxu_dtype),
                       preferred_element_type=jnp.float32) + b

    def bn(h, g, be):
        m = jnp.mean(h, axis=0, keepdims=True)
        v = jnp.mean((h - m) ** 2, axis=0, keepdims=True)
        return (h - m) / jnp.sqrt(v + EPS) * g + be

    h = mm(x, params["bottom_w"], params["bottom_b"])
    for i in range(1, min(num_layer, 5)):
        if use_bn:
            h = bn(h, params[f"bn_{i}_g"], params[f"bn_{i}_b"])
        if use_act:
            h = jnp.maximum(h, 0.0)
        h = mm(h, params[f"fc_{i}_w"], params[f"fc_{i}_b"])
    if use_bn:
        h = bn(h, params["bn_final_g"], params["bn_final_b"])
    if use_act:
        h = jnp.maximum(h, 0.0)
    return mm(h, params["fc_final_w"], params["fc_final_b"])


# ----------------------------------------------------------------------------
if __name__ == "__main__":
    key = jax.random.PRNGKey(0)
    k_x, k_p = jax.random.split(key)

    batch = 8
    in_features = 64
    size_bottom_out = 32
    num_classes = 10
    num_layer = 3

    x = jax.random.normal(k_x, (batch, in_features), jnp.float32)
    params = init_params(k_p, in_features, size_bottom_out, num_classes)

    fwd = jax.jit(functools.partial(
        bottom_model_plus_forward, num_layer=num_layer, use_bn=True,
        activation_func_type="ReLU"))
    out = jax.block_until_ready(fwd(x, params))

    ref = reference_forward(
        x, params, num_layer=num_layer, use_bn=True,
        activation_func_type="ReLU")

    assert out.shape == (batch, num_classes)
    assert jnp.allclose(out, ref, atol=2e-3, rtol=2e-3), (
        f"max abs err {jnp.max(jnp.abs(out - ref))}")

    # also exercise the no-BN / no-activation configuration once
    out2 = jax.block_until_ready(bottom_model_plus_forward(
        x, params, num_layer=1, use_bn=False, activation_func_type="None"))
    ref2 = reference_forward(
        x, params, num_layer=1, use_bn=False, activation_func_type="None")
    assert jnp.allclose(out2, ref2, atol=2e-3, rtol=2e-3), (
        f"max abs err {jnp.max(jnp.abs(out2 - ref2))}")

    print("KERNEL_OK")
</pallas_src>

<mosaic_0001>
module attributes {stable_mosaic.version = 11 : i64} {
  func.func @_fused_forward_kernel(%arg0: memref<8x128xf32, #tpu.memory_space<vmem>>, %arg1: memref<128x128xf32, #tpu.memory_space<vmem>>, %arg2: memref<1x128xf32, #tpu.memory_space<vmem>>, %arg3: memref<1x128xf32, #tpu.memory_space<vmem>>, %arg4: memref<1x128xf32, #tpu.memory_space<vmem>>, %arg5: memref<128x128xf32, #tpu.memory_space<vmem>>, %arg6: memref<1x128xf32, #tpu.memory_space<vmem>>, %arg7: memref<1x128xf32, #tpu.memory_space<vmem>>, %arg8: memref<1x128xf32, #tpu.memory_space<vmem>>, %arg9: memref<128x128xf32, #tpu.memory_space<vmem>>, %arg10: memref<1x128xf32, #tpu.memory_space<vmem>>, %arg11: memref<1x128xf32, #tpu.memory_space<vmem>>, %arg12: memref<1x128xf32, #tpu.memory_space<vmem>>, %arg13: memref<128x128xf32, #tpu.memory_space<vmem>>, %arg14: memref<1x128xf32, #tpu.memory_space<vmem>>, %arg15: memref<8x128xf32, #tpu.memory_space<vmem>>) attributes {dimension_semantics = [], scalar_prefetch = 0 : i64, scratch_operands = 0 : i64, tpu.core_type = #tpu.core_type<tc>} {
    %c0 = arith.constant 0 : index
    %c0_0 = arith.constant 0 : index
    %0 = vector.load %arg0[%c0, %c0_0] : memref<8x128xf32, #tpu.memory_space<vmem>>, vector<8x128xf32>
    %c0_1 = arith.constant 0 : index
    %c0_2 = arith.constant 0 : index
    %1 = vector.load %arg1[%c0_1, %c0_2] : memref<128x128xf32, #tpu.memory_space<vmem>>, vector<128x128xf32>
    %c0_3 = arith.constant 0 : index
    %c0_4 = arith.constant 0 : index
    %2 = vector.load %arg2[%c0_3, %c0_4] : memref<1x128xf32, #tpu.memory_space<vmem>>, vector<1x128xf32>
    %3 = arith.truncf %0 : vector<8x128xf32> to vector<8x128xbf16>
    %4 = arith.truncf %1 : vector<128x128xf32> to vector<128x128xbf16>
    %cst = arith.constant dense<0.000000e+00> : vector<8x128xf32>
    %5 = tpu.matmul %3, %4, %cst {dimension_numbers = #tpu.dot_dimension_numbers<[1], [0], [0], [1], [0, 0, 1, 1], [], []>} : vector<8x128xbf16>, vector<128x128xbf16>, vector<8x128xf32> -> vector<8x128xf32>
    %6 = vector.broadcast %2 : vector<1x128xf32> to vector<8x128xf32>
    %7 = arith.addf %5, %6 : vector<8x128xf32>
    %c0_5 = arith.constant 0 : index
    %c0_6 = arith.constant 0 : index
    %8 = vector.load %arg3[%c0_5, %c0_6] : memref<1x128xf32, #tpu.memory_space<vmem>>, vector<1x128xf32>
    %c0_7 = arith.constant 0 : index
    %c0_8 = arith.constant 0 : index
    %9 = vector.load %arg4[%c0_7, %c0_8] : memref<1x128xf32, #tpu.memory_space<vmem>>, vector<1x128xf32>
    %cst_9 = arith.constant dense<0.000000e+00> : vector<128xf32>
    %10 = vector.multi_reduction <add>, %7, %cst_9 [0] : vector<8x128xf32> to vector<128xf32>
    %11 = vector.shape_cast %10 : vector<128xf32> to vector<1x128xf32>
    %cst_10 = arith.constant 8.000000e+00 : f32
    %12 = vector.broadcast %cst_10 : f32 to vector<1x128xf32>
    %13 = arith.divf %11, %12 : vector<1x128xf32>
    %14 = arith.mulf %7, %7 : vector<8x128xf32>
    %cst_11 = arith.constant dense<0.000000e+00> : vector<128xf32>
    %15 = vector.multi_reduction <add>, %14, %cst_11 [0] : vector<8x128xf32> to vector<128xf32>
    %16 = vector.shape_cast %15 : vector<128xf32> to vector<1x128xf32>
    %cst_12 = arith.constant 8.000000e+00 : f32
    %17 = vector.broadcast %cst_12 : f32 to vector<1x128xf32>
    %18 = arith.divf %16, %17 : vector<1x128xf32>
    %19 = arith.mulf %13, %13 : vector<1x128xf32>
    %20 = arith.subf %18, %19 : vector<1x128xf32>
    %cst_13 = arith.constant 0.000000e+00 : f32
    %21 = vector.broadcast %cst_13 : f32 to vector<1x128xf32>
    %22 = arith.maximumf %20, %21 : vector<1x128xf32>
    %23 = vector.broadcast %13 : vector<1x128xf32> to vector<8x128xf32>
    %24 = arith.subf %7, %23 : vector<8x128xf32>
    %cst_14 = arith.constant 9.99999974E-6 : f32
    %25 = vector.broadcast %cst_14 : f32 to vector<1x128xf32>
    %26 = arith.addf %22, %25 : vector<1x128xf32>
    %27 = math.rsqrt %26 : vector<1x128xf32>
    %28 = vector.broadcast %27 : vector<1x128xf32> to vector<8x128xf32>
    %29 = arith.mulf %24, %28 : vector<8x128xf32>
    %30 = vector.broadcast %8 : vector<1x128xf32> to vector<8x128xf32>
    %31 = arith.mulf %29, %30 : vector<8x128xf32>
    %32 = vector.broadcast %9 : vector<1x128xf32> to vector<8x128xf32>
    %33 = arith.addf %31, %32 : vector<8x128xf32>
    %cst_15 = arith.constant 0.000000e+00 : f32
    %34 = vector.broadcast %cst_15 : f32 to vector<8x128xf32>
    %35 = arith.maximumf %33, %34 : vector<8x128xf32>
    %c0_16 = arith.constant 0 : index
    %c0_17 = arith.constant 0 : index
    %36 = vector.load %arg5[%c0_16, %c0_17] : memref<128x128xf32, #tpu.memory_space<vmem>>, vector<128x128xf32>
    %c0_18 = arith.constant 0 : index
    %c0_19 = arith.constant 0 : index
    %37 = vector.load %arg6[%c0_18, %c0_19] : memref<1x128xf32, #tpu.memory_space<vmem>>, vector<1x128xf32>
    %38 = arith.truncf %35 : vector<8x128xf32> to vector<8x128xbf16>
    %39 = arith.truncf %36 : vector<128x128xf32> to vector<128x128xbf16>
    %cst_20 = arith.constant dense<0.000000e+00> : vector<8x128xf32>
    %40 = tpu.matmul %38, %39, %cst_20 {dimension_numbers = #tpu.dot_dimension_numbers<[1], [0], [0], [1], [0, 0, 1, 1], [], []>} : vector<8x128xbf16>, vector<128x128xbf16>, vector<8x128xf32> -> vector<8x128xf32>
    %41 = vector.broadcast %37 : vector<1x128xf32> to vector<8x128xf32>
    %42 = arith.addf %40, %41 : vector<8x128xf32>
    %c0_21 = arith.constant 0 : index
    %c0_22 = arith.constant 0 : index
    %43 = vector.load %arg7[%c0_21, %c0_22] : memref<1x128xf32, #tpu.memory_space<vmem>>, vector<1x128xf32>
    %c0_23 = arith.constant 0 : index
    %c0_24 = arith.constant 0 : index
    %44 = vector.load %arg8[%c0_23, %c0_24] : memref<1x128xf32, #tpu.memory_space<vmem>>, vector<1x128xf32>
    %cst_25 = arith.constant dense<0.000000e+00> : vector<128xf32>
    %45 = vector.multi_reduction <add>, %42, %cst_25 [0] : vector<8x128xf32> to vector<128xf32>
    %46 = vector.shape_cast %45 : vector<128xf32> to vector<1x128xf32>
    %cst_26 = arith.constant 8.000000e+00 : f32
    %47 = vector.broadcast %cst_26 : f32 to vector<1x128xf32>
    %48 = arith.divf %46, %47 : vector<1x128xf32>
    %49 = arith.mulf %42, %42 : vector<8x128xf32>
    %cst_27 = arith.constant dense<0.000000e+00> : vector<128xf32>
    %50 = vector.multi_reduction <add>, %49, %cst_27 [0] : vector<8x128xf32> to vector<128xf32>
    %51 = vector.shape_cast %50 : vector<128xf32> to vector<1x128xf32>
    %cst_28 = arith.constant 8.000000e+00 : f32
    %52 = vector.broadcast %cst_28 : f32 to vector<1x128xf32>
    %53 = arith.divf %51, %52 : vector<1x128xf32>
    %54 = arith.mulf %48, %48 : vector<1x128xf32>
    %55 = arith.subf %53, %54 : vector<1x128xf32>
    %cst_29 = arith.constant 0.000000e+00 : f32
    %56 = vector.broadcast %cst_29 : f32 to vector<1x128xf32>
    %57 = arith.maximumf %55, %56 : vector<1x128xf32>
    %58 = vector.broadcast %48 : vector<1x128xf32> to vector<8x128xf32>
    %59 = arith.subf %42, %58 : vector<8x128xf32>
    %cst_30 = arith.constant 9.99999974E-6 : f32
    %60 = vector.broadcast %cst_30 : f32 to vector<1x128xf32>
    %61 = arith.addf %57, %60 : vector<1x128xf32>
    %62 = math.rsqrt %61 : vector<1x128xf32>
    %63 = vector.broadcast %62 : vector<1x128xf32> to vector<8x128xf32>
    %64 = arith.mulf %59, %63 : vector<8x128xf32>
    %65 = vector.broadcast %43 : vector<1x128xf32> to vector<8x128xf32>
    %66 = arith.mulf %64, %65 : vector<8x128xf32>
    %67 = vector.broadcast %44 : vector<1x128xf32> to vector<8x128xf32>
    %68 = arith.addf %66, %67 : vector<8x128xf32>
    %cst_31 = arith.constant 0.000000e+00 : f32
    %69 = vector.broadcast %cst_31 : f32 to vector<8x128xf32>
    %70 = arith.maximumf %68, %69 : vector<8x128xf32>
    %c0_32 = arith.constant 0 : index
    %c0_33 = arith.constant 0 : index
    %71 = vector.load %arg9[%c0_32, %c0_33] : memref<128x128xf32, #tpu.memory_space<vmem>>, vector<128x128xf32>
    %c0_34 = arith.constant 0 : index
    %c0_35 = arith.constant 0 : index
    %72 = vector.load %arg10[%c0_34, %c0_35] : memref<1x128xf32, #tpu.memory_space<vmem>>, vector<1x128xf32>
    %73 = arith.truncf %70 : vector<8x128xf32> to vector<8x128xbf16>
    %74 = arith.truncf %71 : vector<128x128xf32> to vector<128x128xbf16>
    %cst_36 = arith.constant dense<0.000000e+00> : vector<8x128xf32>
    %75 = tpu.matmul %73, %74, %cst_36 {dimension_numbers = #tpu.dot_dimension_numbers<[1], [0], [0], [1], [0, 0, 1, 1], [], []>} : vector<8x128xbf16>, vector<128x128xbf16>, vector<8x128xf32> -> vector<8x128xf32>
    %76 = vector.broadcast %72 : vector<1x128xf32> to vector<8x128xf32>
    %77 = arith.addf %75, %76 : vector<8x128xf32>
    %c0_37 = arith.constant 0 : index
    %c0_38 = arith.constant 0 : index
    %78 = vector.load %arg11[%c0_37, %c0_38] : memref<1x128xf32, #tpu.memory_space<vmem>>, vector<1x128xf32>
    %c0_39 = arith.constant 0 : index
    %c0_40 = arith.constant 0 : index
    %79 = vector.load %arg12[%c0_39, %c0_40] : memref<1x128xf32, #tpu.memory_space<vmem>>, vector<1x128xf32>
    %cst_41 = arith.constant dense<0.000000e+00> : vector<128xf32>
    %80 = vector.multi_reduction <add>, %77, %cst_41 [0] : vector<8x128xf32> to vector<128xf32>
    %81 = vector.shape_cast %80 : vector<128xf32> to vector<1x128xf32>
    %cst_42 = arith.constant 8.000000e+00 : f32
    %82 = vector.broadcast %cst_42 : f32 to vector<1x128xf32>
    %83 = arith.divf %81, %82 : vector<1x128xf32>
    %84 = arith.mulf %77, %77 : vector<8x128xf32>
    %cst_43 = arith.constant dense<0.000000e+00> : vector<128xf32>
    %85 = vector.multi_reduction <add>, %84, %cst_43 [0] : vector<8x128xf32> to vector<128xf32>
    %86 = vector.shape_cast %85 : vector<128xf32> to vector<1x128xf32>
    %cst_44 = arith.constant 8.000000e+00 : f32
    %87 = vector.broadcast %cst_44 : f32 to vector<1x128xf32>
    %88 = arith.divf %86, %87 : vector<1x128xf32>
    %89 = arith.mulf %83, %83 : vector<1x128xf32>
    %90 = arith.subf %88, %89 : vector<1x128xf32>
    %cst_45 = arith.constant 0.000000e+00 : f32
    %91 = vector.broadcast %cst_45 : f32 to vector<1x128xf32>
    %92 = arith.maximumf %90, %91 : vector<1x128xf32>
    %93 = vector.broadcast %83 : vector<1x128xf32> to vector<8x128xf32>
    %94 = arith.subf %77, %93 : vector<8x128xf32>
    %cst_46 = arith.constant 9.99999974E-6 : f32
    %95 = vector.broadcast %cst_46 : f32 to vector<1x128xf32>
    %96 = arith.addf %92, %95 : vector<1x128xf32>
    %97 = math.rsqrt %96 : vector<1x128xf32>
    %98 = vector.broadcast %97 : vector<1x128xf32> to vector<8x128xf32>
    %99 = arith.mulf %94, %98 : vector<8x128xf32>
    %100 = vector.broadcast %78 : vector<1x128xf32> to vector<8x128xf32>
    %101 = arith.mulf %99, %100 : vector<8x128xf32>
    %102 = vector.broadcast %79 : vector<1x128xf32> to vector<8x128xf32>
    %103 = arith.addf %101, %102 : vector<8x128xf32>
    %cst_47 = arith.constant 0.000000e+00 : f32
    %104 = vector.broadcast %cst_47 : f32 to vector<8x128xf32>
    %105 = arith.maximumf %103, %104 : vector<8x128xf32>
    %c0_48 = arith.constant 0 : index
    %c0_49 = arith.constant 0 : index
    %106 = vector.load %arg13[%c0_48, %c0_49] : memref<128x128xf32, #tpu.memory_space<vmem>>, vector<128x128xf32>
    %c0_50 = arith.constant 0 : index
    %c0_51 = arith.constant 0 : index
    %107 = vector.load %arg14[%c0_50, %c0_51] : memref<1x128xf32, #tpu.memory_space<vmem>>, vector<1x128xf32>
    %108 = arith.truncf %105 : vector<8x128xf32> to vector<8x128xbf16>
    %109 = arith.truncf %106 : vector<128x128xf32> to vector<128x128xbf16>
    %cst_52 = arith.constant dense<0.000000e+00> : vector<8x128xf32>
    %110 = tpu.matmul %108, %109, %cst_52 {dimension_numbers = #tpu.dot_dimension_numbers<[1], [0], [0], [1], [0, 0, 1, 1], [], []>} : vector<8x128xbf16>, vector<128x128xbf16>, vector<8x128xf32> -> vector<8x128xf32>
    %111 = vector.broadcast %107 : vector<1x128xf32> to vector<8x128xf32>
    %112 = arith.addf %110, %111 : vector<8x128xf32>
    %c0_53 = arith.constant 0 : index
    %c0_54 = arith.constant 0 : index
    %113 = vector.load %arg15[%c0_53, %c0_54] : memref<8x128xf32, #tpu.memory_space<vmem>>, vector<8x128xf32>
    tpu.vector_store %arg15[%c0_53, %c0_54], %112 {strides = array<i32>} : memref<8x128xf32, #tpu.memory_space<vmem>>, vector<8x128xf32>,
    return
  }
}

</mosaic_0001>

<bundles_post_ra>
// kernel: bottom_model_plus_forward.1
= control target key start
LH: loop header
LB: loop body
LE: loop exit
PB: predicated region body
PF: predicated region fallthrough
CT: control target
= control target key end

     0   :  { %v631_v3 = vmov 0.0   ;;  %vm632_vm0 = vmmov 0   ;;  %s982_s0 = inlined_call_operand.vmem [shape: f32[8,128], index: 0, kind: input, shape index: {}]   ;;  %s983_s1 = inlined_call_operand.vmem [shape: f32[128,128], index: 1, kind: input, shape index: {}]   ;;  %s984_s2 = inlined_call_operand.vmem [shape: f32[1,128], index: 2, kind: input, shape index: {}]   ;;  %s985_s3 = inlined_call_operand.vmem [shape: f32[1,128], index: 3, kind: input, shape index: {}]   ;;  %s986_s4 = inlined_call_operand.vmem [shape: f32[1,128], index: 4, kind: input, shape index: {}]   ;;  %s987_s5 = inlined_call_operand.vmem [shape: f32[128,128], index: 5, kind: input, shape index: {}]   ;;  %s988_s6 = inlined_call_operand.vmem [shape: f32[1,128], index: 6, kind: input, shape index: {}]   ;;  %s989_s7 = inlined_call_operand.vmem [shape: f32[1,128], index: 7, kind: input, shape index: {}]   ;;  %s990_s8 = inlined_call_operand.vmem [shape: f32[1,128], index: 8, kind: input, shape index: {}]   ;;  %s991_s9 = inlined_call_operand.vmem [shape: f32[128,128], index: 9, kind: input, shape index: {}]   ;;  %s992_s10 = inlined_call_operand.vmem [shape: f32[1,128], index: 10, kind: input, shape index: {}]   ;;  %s993_s11 = inlined_call_operand.vmem [shape: f32[1,128], index: 11, kind: input, shape index: {}]   ;;  %s994_s12 = inlined_call_operand.vmem [shape: f32[1,128], index: 12, kind: input, shape index: {}]   ;;  %s995_s13 = inlined_call_operand.vmem [shape: f32[128,128], index: 13, kind: input, shape index: {}]   ;;  %s996_s14 = inlined_call_operand.vmem [shape: f32[1,128], index: 14, kind: input, shape index: {}]   ;;  %s997_s15 = inlined_call_operand.hbm [shape: f32[8,128], index: 15, kind: output, shape index: {}]  }
   0x1   :  { %v67_v0 = vld [vmem:[%s983_s1 + $0x70] sm:$0xff]  ;;  %v68_v1 = vld [vmem:[%s983_s1 + $0x78] sm:$0xff]  ;;  %v65_v2 = vld [vmem:[%s983_s1 + $0x60] sm:$0xff]  ;;  %520 = vmatprep.subr.bf16.mxu0 %v631_v3  ;;  %536 = vmatprep.mubr.msk.bf16.mxu0 %vm632_vm0, %v631_v3 }
   0x2   :  { %v78_v4 = vpack.c.bf16 %v68_v1, %v67_v0  ;;  %v66_v5 = vld [vmem:[%s983_s1 + $0x68] sm:$0xff]  ;;  %540 = vmatprep.subr.bf16.mxu1 %v631_v3  ;;  %556 = vmatprep.mubr.msk.bf16.mxu1 %vm632_vm0, %v631_v3  ;;  %v63_v7 = vld [vmem:[%s983_s1 + $0x50] sm:$0xff]  ;;  %v64_v8 = vld [vmem:[%s983_s1 + $0x58] sm:$0xff] }
   0x3   :  { %v77_v6 = vpack.c.bf16 %v66_v5, %v65_v2 }
   0x4   :  { %521 = vmatpush3.bf16.msra.mxu0 %v78_v4 }
   0x5   :  { %522 = vmatprep.subr.bf16.mxu0 %v631_v3 }
   0x6   :  { %20 = vsyncpa [#allocation3], 0  ;;  %v76_v9 = vpack.c.bf16 %v64_v8, %v63_v7  ;;  %v61_v10 = vld [vmem:[%s983_s1 + $0x40] sm:$0xff]  ;;  %v62_v11 = vld [vmem:[%s983_s1 + $0x48] sm:$0xff] }
   0x7   :  { %v75_v12 = vpack.c.bf16 %v62_v11, %v61_v10  ;;  %v59_v13 = vld [vmem:[%s983_s1 + $0x30] sm:$0xff]  ;;  %v60_v14 = vld [vmem:[%s983_s1 + $0x38] sm:$0xff]  ;;  %v57_v16 = vld [vmem:[%s983_s1 + $0x20] sm:$0xff] }
   0x8   :  { %523 = vmatpush3.bf16.msra.mxu0 %v77_v6  ;;  %v74_v15 = vpack.c.bf16 %v60_v14, %v59_v13  ;;  %v58_v17 = vld [vmem:[%s983_s1 + $0x28] sm:$0xff]  ;;  %v55_v19 = vld [vmem:[%s983_s1 + $0x10] sm:$0xff]  ;;  %v56_v20 = vld [vmem:[%s983_s1 + $0x18] sm:$0xff] }
   0x9   :  { %524 = vmatprep.subr.bf16.mxu0 %v631_v3  ;;  %v73_v18 = vpack.c.bf16 %v58_v17, %v57_v16  ;;  %v72_v21 = vpack.c.bf16 %v56_v20, %v55_v19  ;;  %v53_v22 = vld [vmem:[%s983_s1] sm:$0xff]  ;;  %v54_v23 = vld [vmem:[%s983_s1 + $0x8] sm:$0xff]  ;;  %v179_v27 = vld [vmem:[%s987_s5 + $0x70] sm:$0xff] }
   0xa   :  { %v71_v24 = vpack.c.bf16 %v54_v23, %v53_v22  ;;  %v52_v25 = vld [vmem:[%s982_s0] sm:$0xff]  ;;  %v180_v28 = vld [vmem:[%s987_s5 + $0x78] sm:$0xff]  ;;  %v178_v31 = vld [vmem:[%s987_s5 + $0x68] sm:$0xff] }
   0xb   :  { %v70_v26 = vpack.c.bf16 %v52_v25, %v52_v25  ;;  %v190_v29 = vpack.c.bf16 %v180_v28, %v179_v27  ;;  %v177_v30 = vld [vmem:[%s987_s5 + $0x60] sm:$0xff]  ;;  %v175_v33 = vld [vmem:[%s987_s5 + $0x50] sm:$0xff]  ;;  %v176_v34 = vld [vmem:[%s987_s5 + $0x58] sm:$0xff] }
   0xc   :  { %525 = vmatpush3.bf16.msra.mxu0 %v76_v9  ;;  %v189_v32 = vpack.c.bf16 %v178_v31, %v177_v30  ;;  %v188_v35 = vpack.c.bf16 %v176_v34, %v175_v33  ;;  %v173_v36 = vld [vmem:[%s987_s5 + $0x40] sm:$0xff]  ;;  %v174_v37 = vld [vmem:[%s987_s5 + $0x48] sm:$0xff]  ;;  %v171_v39 = vld [vmem:[%s987_s5 + $0x30] sm:$0xff] }
   0xd   :  { %526 = vmatprep.subr.bf16.mxu0 %v631_v3  ;;  %541 = vmatpush3.bf16.msra.mxu1 %v190_v29  ;;  %v187_v38 = vpack.c.bf16 %v174_v37, %v173_v36  ;;  %v172_v40 = vld [vmem:[%s987_s5 + $0x38] sm:$0xff]  ;;  %v169_v42 = vld [vmem:[%s987_s5 + $0x20] sm:$0xff]  ;;  %v170_v43 = vld [vmem:[%s987_s5 + $0x28] sm:$0xff] }
   0xe   :  { %542 = vmatprep.subr.bf16.mxu1 %v631_v3  ;;  %v186_v41 = vpack.c.bf16 %v172_v40, %v171_v39  ;;  %v185_v44 = vpack.c.bf16 %v170_v43, %v169_v42  ;;  %v167_v45 = vld [vmem:[%s987_s5 + $0x10] sm:$0xff]  ;;  %v168_v46 = vld [vmem:[%s987_s5 + $0x18] sm:$0xff]  ;;  %v165_v48 = vld [vmem:[%s987_s5] sm:$0xff] }
   0xf   :  { %v184_v47 = vpack.c.bf16 %v168_v46, %v167_v45  ;;  %v166_v49 = vld [vmem:[%s987_s5 + $0x8] sm:$0xff]  ;;  %v474_v51 = vld [vmem:[%s984_s2] ss:$0 sm:$0xff]  ;;  %v290_v22 = vld [vmem:[%s991_s9 + $0x70] sm:$0xff] }
  0x10   :  { %527 = vmatpush3.bf16.msra.mxu0 %v75_v12  ;;  %v183_v50 = vpack.c.bf16 %v166_v49, %v165_v48  ;;  %v476_v17 = vld [vmem:[%s986_s4] ss:$0 sm:$0xff]  ;;  %v291_v23 = vld [vmem:[%s991_s9 + $0x78] sm:$0xff]  ;;  %v286_v28 = vld [vmem:[%s991_s9 + $0x50] sm:$0xff]  ;;  %s633_s4 = smov [#allocation2]  }
  0x11   :  { %528 = vmatprep.subr.bf16.mxu0 %v631_v3  ;;  %543 = vmatpush3.bf16.msra.mxu1 %v189_v32  ;;  %v288_v25 = vld [vmem:[%s991_s9 + $0x60] sm:$0xff]  ;;  %v287_v29 = vld [vmem:[%s991_s9 + $0x58] sm:$0xff]  ;;  %v285_v32 = vld [vmem:[%s991_s9 + $0x48] sm:$0xff]  ;;  %s466_s26 = sshll.u32 %s633_s4, 4  ;;  %s467_s26 = int_to_ptr.vmem [resolvable:$true] %s466_s26 }
  0x12   :  { %544 = vmatprep.subr.bf16.mxu1 %v631_v3  ;;  %v299_v30 = vpack.c.bf16 %v287_v29, %v286_v28  ;;  %v284_v31 = vld [vmem:[%s991_s9 + $0x40] sm:$0xff]  ;;  %v282_v34 = vld [vmem:[%s991_s9 + $0x30] sm:$0xff]  ;;  %p614_p1 = scmp.lt.s32.totalorder %s467_s26, %s467_s26 }
  0x13   :  { %v298_v33 = vpack.c.bf16 %v285_v32, %v284_v31  ;;  %v280_v37 = vld [vmem:[%s991_s9 + $0x20] sm:$0xff]  ;;  %v278_v40 = vld [vmem:[%s991_s9 + $0x10] sm:$0xff] }
  0x14   :  { %529 = vmatpush3.bf16.msra.mxu0 %v74_v15  ;;  %v475_v15 = vld [vmem:[%s985_s3] ss:$0 sm:$0xff]  ;;  %v393_v29 = vld [vmem:[%s995_s13 + $0x30] sm:$0xff] }
  0x15   :  { %530 = vmatprep.subr.bf16.mxu0 %v631_v3  ;;  %545 = vmatpush3.bf16.msra.mxu1 %v188_v35  ;;  %v283_v35 = vld [vmem:[%s991_s9 + $0x38] sm:$0xff]  ;;  %v276_v42 = vld [vmem:[%s991_s9] sm:$0xff] }
  0x16   :  { %546 = vmatprep.subr.bf16.mxu1 %v631_v3  ;;  %v297_v36 = vpack.c.bf16 %v283_v35, %v282_v34  ;;  %v477_v46 = vld [vmem:[%s988_s6] ss:$0 sm:$0xff]  ;;  %v389_v35 = vld [vmem:[%s995_s13 + $0x10] sm:$0xff] }
  0x17   :  { %v391_v32 = vld [vmem:[%s995_s13 + $0x20] sm:$0xff] }
  0x18   :  { %531 = vmatpush3.bf16.msra.mxu0 %v73_v18 }
  0x19   :  { %532 = vmatprep.subr.bf16.mxu0 %v631_v3  ;;  %547 = vmatpush3.bf16.msra.mxu1 %v187_v38  ;;  %v281_v38 = vld [vmem:[%s991_s9 + $0x28] sm:$0xff] }
  0x1a   :  { %548 = vmatprep.subr.bf16.mxu1 %v631_v3  ;;  %v296_v39 = vpack.c.bf16 %v281_v38, %v280_v37  ;;  %v387_v37 = vld [vmem:[%s995_s13] sm:$0xff] }
  0x1c   :  { %533 = vmatpush3.bf16.msra.mxu0 %v72_v21 }
  0x1d   :  { %534 = vmatprep.subr.bf16.mxu0 %v631_v3  ;;  %549 = vmatpush3.bf16.msra.mxu1 %v186_v41  ;;  %v279_v41 = vld [vmem:[%s991_s9 + $0x18] sm:$0xff] }
  0x1e   :  { %550 = vmatprep.subr.bf16.mxu1 %v631_v3  ;;  %v295_v43 = vpack.c.bf16 %v279_v41, %v278_v40  ;;  %v480_v41 = vld [vmem:[%s992_s10] ss:$0 sm:$0xff] }
  0x20   :  { %535 = vmatpush3.bf16.msra.mxu0 %v71_v24  ;;  %v301_v24 = vpack.c.bf16 %v291_v23, %v290_v22  ;;  %v397_v23 = vld [vmem:[%s995_s13 + $0x50] sm:$0xff] }
  0x21   :  { %560 = vmatprep.subr.bf16.mxu0 %v631_v3  ;;  %551 = vmatpush3.bf16.msra.mxu1 %v185_v44  ;;  %v277_v44 = vld [vmem:[%s991_s9 + $0x8] sm:$0xff] }
  0x22   :  { %552 = vmatprep.subr.bf16.mxu1 %v631_v3  ;;  %v294_v45 = vpack.c.bf16 %v277_v44, %v276_v42 }
  0x23   :  { %537 = vmatmul.mubr.bf16.vlgmr.msra.gmra.mxu0 %v70_v26  ;;  %v289_v26 = vld [vmem:[%s991_s9 + $0x68] sm:$0xff] }
  0x24   :  { %576 = vmatprep.mubr.msk.bf16.mxu0 %vm632_vm0, %v631_v3  ;;  %561 = vmatpush3.bf16.msra.mxu0 %v301_v24  ;;  %v300_v27 = vpack.c.bf16 %v289_v26, %v288_v25  ;;  %v398_v24 = vld [vmem:[%s995_s13 + $0x58] sm:$0xff]  ;;  %v395_v26 = vld [vmem:[%s995_s13 + $0x40] sm:$0xff] }
  0x25   :  { %553 = vmatpush3.bf16.msra.mxu1 %v184_v47  ;;  %562 = vmatprep.subr.bf16.mxu0 %v631_v3  ;;  %v410_v25 = vpack.c.bf16 %v398_v24, %v397_v23 }
  0x26   :  { %554 = vmatprep.subr.bf16.mxu1 %v631_v3 }
  0x28   :  { %563 = vmatpush3.bf16.msra.mxu0 %v300_v27  ;;  %v396_v27 = vld [vmem:[%s995_s13 + $0x48] sm:$0xff] }
  0x29   :  { %555 = vmatpush3.bf16.msra.mxu1 %v183_v50  ;;  %564 = vmatprep.subr.bf16.mxu0 %v631_v3  ;;  %v409_v28 = vpack.c.bf16 %v396_v27, %v395_v26 }
  0x2a   :  { %580 = vmatprep.subr.bf16.mxu1 %v631_v3 }
  0x2c   :  { %565 = vmatpush3.bf16.msra.mxu0 %v299_v30  ;;  %v394_v30 = vld [vmem:[%s995_s13 + $0x38] sm:$0xff] }
  0x2d   :  { %566 = vmatprep.subr.bf16.mxu0 %v631_v3  ;;  %v408_v31 = vpack.c.bf16 %v394_v30, %v393_v29 }
  0x30   :  { %567 = vmatpush3.bf16.msra.mxu0 %v298_v33  ;;  %v392_v33 = vld [vmem:[%s995_s13 + $0x28] sm:$0xff] }
  0x31   :  { %568 = vmatprep.subr.bf16.mxu0 %v631_v3  ;;  %v407_v34 = vpack.c.bf16 %v392_v33, %v391_v32 }
  0x34   :  { %569 = vmatpush3.bf16.msra.mxu0 %v297_v36  ;;  %v390_v36 = vld [vmem:[%s995_s13 + $0x18] sm:$0xff] }
  0x35   :  { %570 = vmatprep.subr.bf16.mxu0 %v631_v3  ;;  %v406_v38 = vpack.c.bf16 %v390_v36, %v389_v35 }
  0x38   :  { %571 = vmatpush3.bf16.msra.mxu0 %v296_v39  ;;  %v388_v39 = vld [vmem:[%s995_s13 + $0x8] sm:$0xff] }
  0x39   :  { %572 = vmatprep.subr.bf16.mxu0 %v631_v3  ;;  %v405_v40 = vpack.c.bf16 %v388_v39, %v387_v37 }
  0x3c   :  { %573 = vmatpush3.bf16.msra.mxu0 %v295_v43 }
  0x3d   :  { %574 = vmatprep.subr.bf16.mxu0 %v631_v3 }
  0x40   :  { %575 = vmatpush3.bf16.msra.mxu0 %v294_v45 }
  0xe3   :  { %v119_v52 = vpop.f32.mrf.mxu0 }
  0xe4   :  { %v120_v53 = vadd.f32 %v474_v51, %v119_v52 }
  0xe5   :  { %v538_v54 = vpop.f32.mrf.mxu0 }
  0xe6   :  { %v127_v55 = vrot.slane %v120_v53, 4  ;;  %v135_v56 = vmul.f32 %v120_v53, %v120_v53 }
  0xe7   :  { %v122_v57 = vpop.f32.mrf.mxu0 }
  0xe8   :  { %v128_v58 = vadd.f32 %v127_v55, %v120_v53  ;;  %v136_v59 = vrot.slane %v135_v56, 4 }
  0xe9   :  { %v539_v60 = vpop.f32.mrf.mxu0 }
  0xea   :  { %v129_v61 = vrot.slane %v128_v58, 2  ;;  %v137_v62 = vadd.f32 %v136_v59, %v135_v56 }
  0xec   :  { %v130_v63 = vadd.f32 %v129_v61, %v128_v58  ;;  %v138_v0 = vrot.slane %v137_v62, 2 }
  0xee   :  { %v131_v1 = vrot.slane %v130_v63, 1  ;;  %v139_v2 = vadd.f32 %v138_v0, %v137_v62 }
  0xf0   :  { %v132_v4 = vadd.f32 %v131_v1, %v130_v63  ;;  %v140_v5 = vrot.slane %v139_v2, 1 }
  0xf2   :  { %v134_v6 = vmul.f32 0.125, %v132_v4  ;;  %v141_v7 = vadd.f32 %v140_v5, %v139_v2 }
  0xf4   :  { %v142_v8 = vmul.f32 0.125, %v141_v7  ;;  %v143_v9 = vmul.f32 %v134_v6, %v134_v6  ;;  %v146_v13 = vsub.f32 %v120_v53, %v134_v6 }
  0xf6   :  { %v144_v10 = vsub.f32 %v142_v8, %v143_v9 }
  0xf8   :  { %v145_v11 = vmax.f32 %v144_v10, 0.0  ;;  %v478_v10 = vld [vmem:[%s989_s7] ss:$0 sm:$0xff] }
  0xfa   :  { %v147_v12 = vadd.f32 1e-05, %v145_v11 }
  0xfc   :  { %603 = vrsqrt.f32 %v147_v12  ;;  %v479_v12 = vld [vmem:[%s990_s8] ss:$0 sm:$0xff] }
 0x109   :  { %v604_v14 = vpop.eup %603 }
 0x10a   :  { %v149_v16 = vmul.f32 %v604_v14, %v146_v13 }
 0x10c   :  { %v156_v18 = vmul.f32 %v475_v15, %v149_v16 }
 0x10e   :  { %v163_v19 = vadd.f32 %v476_v17, %v156_v18  ;;  %v401_v17 = vld [vmem:[%s995_s13 + $0x70] sm:$0xff]  ;;  %v402_v18 = vld [vmem:[%s995_s13 + $0x78] sm:$0xff] }
 0x110   :  { %v164_v20 = vmax.f32 %v163_v19, 0.0  ;;  %v412_v19 = vpack.c.bf16 %v402_v18, %v401_v17 }
 0x112   :  { %v182_v21 = vpack.c.bf16 %v164_v20, %v164_v20  ;;  %v399_v20 = vld [vmem:[%s995_s13 + $0x60] sm:$0xff] }
 0x114   :  { %557 = vmatmul.mubr.bf16.vlgmr.msra.gmra.mxu1 %v182_v21  ;;  %v400_v21 = vld [vmem:[%s995_s13 + $0x68] sm:$0xff] }
 0x115   :  { %596 = vmatprep.mubr.msk.bf16.mxu1 %vm632_vm0, %v631_v3  ;;  %581 = vmatpush3.bf16.msra.mxu1 %v412_v19  ;;  %v411_v22 = vpack.c.bf16 %v400_v21, %v399_v20 }
 0x116   :  { %582 = vmatprep.subr.bf16.mxu1 %v631_v3 }
 0x119   :  { %583 = vmatpush3.bf16.msra.mxu1 %v411_v22 }
 0x11a   :  { %584 = vmatprep.subr.bf16.mxu1 %v631_v3 }
 0x11d   :  { %585 = vmatpush3.bf16.msra.mxu1 %v410_v25 }
 0x11e   :  { %586 = vmatprep.subr.bf16.mxu1 %v631_v3 }
 0x121   :  { %587 = vmatpush3.bf16.msra.mxu1 %v409_v28 }
 0x122   :  { %588 = vmatprep.subr.bf16.mxu1 %v631_v3 }
 0x125   :  { %589 = vmatpush3.bf16.msra.mxu1 %v408_v31 }
 0x126   :  { %590 = vmatprep.subr.bf16.mxu1 %v631_v3 }
 0x129   :  { %591 = vmatpush3.bf16.msra.mxu1 %v407_v34 }
 0x12a   :  { %592 = vmatprep.subr.bf16.mxu1 %v631_v3 }
 0x12d   :  { %593 = vmatpush3.bf16.msra.mxu1 %v406_v38 }
 0x12e   :  { %594 = vmatprep.subr.bf16.mxu1 %v631_v3 }
 0x131   :  { %595 = vmatpush3.bf16.msra.mxu1 %v405_v40 }
 0x1d4   :  { %v231_v47 = vpop.f32.mrf.mxu1 }
 0x1d5   :  { %v232_v48 = vadd.f32 %v477_v46, %v231_v47 }
 0x1d6   :  { %v558_v49 = vpop.f32.mrf.mxu1 }
 0x1d7   :  { %v239_v50 = vrot.slane %v232_v48, 4  ;;  %v246_v51 = vmul.f32 %v232_v48, %v232_v48 }
 0x1d8   :  { %v234_v52 = vpop.f32.mrf.mxu1 }
 0x1d9   :  { %v240_v53 = vadd.f32 %v239_v50, %v232_v48  ;;  %v247_v54 = vrot.slane %v246_v51, 4 }
 0x1da   :  { %v559_v55 = vpop.f32.mrf.mxu1 }
 0x1db   :  { %v241_v56 = vrot.slane %v240_v53, 2  ;;  %v248_v57 = vadd.f32 %v247_v54, %v246_v51 }
 0x1dd   :  { %v242_v58 = vadd.f32 %v241_v56, %v240_v53  ;;  %v249_v59 = vrot.slane %v248_v57, 2 }
 0x1df   :  { %v243_v60 = vrot.slane %v242_v58, 1  ;;  %v250_v61 = vadd.f32 %v249_v59, %v248_v57 }
 0x1e1   :  { %v244_v62 = vadd.f32 %v243_v60, %v242_v58  ;;  %v251_v63 = vrot.slane %v250_v61, 1 }
 0x1e3   :  { %v245_v0 = vmul.f32 0.125, %v244_v62  ;;  %v252_v1 = vadd.f32 %v251_v63, %v250_v61 }
 0x1e5   :  { %v253_v2 = vmul.f32 0.125, %v252_v1  ;;  %v254_v4 = vmul.f32 %v245_v0, %v245_v0  ;;  %v257_v8 = vsub.f32 %v232_v48, %v245_v0 }
 0x1e7   :  { %v255_v5 = vsub.f32 %v253_v2, %v254_v4  ;;  %v481_v4 = vld [vmem:[%s993_s11] ss:$0 sm:$0xff]  ;;  %s609_s11 = scalar_lea.vmem %s467_s26, 128 }
 0x1e8   :  { %p610_p0 = scmp.ne.s32.totalorder %s467_s26, %s609_s11  ;;  %p615_p2 = scmp.lt.s32.totalorder %s609_s11, %s609_s11 }
 0x1e9   :  { %v256_v6 = vmax.f32 %v255_v5, 0.0 }
 0x1ea   :  { %p616_p3 = por %p615_p2, %p614_p1 }
 0x1eb   :  { %v258_v7 = vadd.f32 1e-05, %v256_v6  ;;  %v482_v6 = vld [vmem:[%s994_s12] ss:$0 sm:$0xff] }
 0x1ec   :  { %p617_p4 = pnand %p616_p3, %p610_p0 }
 0x1ed   :  { %605 = vrsqrt.f32 %v258_v7 }
 0x1fa   :  { %v606_v9 = vpop.eup %605 }
 0x1fb   :  { %v260_v11 = vmul.f32 %v606_v9, %v257_v8 }
 0x1fd   :  { %v267_v13 = vmul.f32 %v478_v10, %v260_v11  ;;  %v483_v11 = vld [vmem:[%s996_s14] ss:$0 sm:$0xff] }
 0x1ff   :  { %v274_v14 = vadd.f32 %v479_v12, %v267_v13 }
 0x201   :  { %v275_v15 = vmax.f32 %v274_v14, 0.0 }
 0x203   :  { %v293_v16 = vpack.c.bf16 %v275_v15, %v275_v15 }
 0x205   :  { %577 = vmatmul.mubr.bf16.vlgmr.msra.gmra.mxu0 %v293_v16 }
 0x2c5   :  { %v342_v42 = vpop.f32.mrf.mxu0 }
 0x2c6   :  { %v343_v43 = vadd.f32 %v480_v41, %v342_v42 }
 0x2c7   :  { %v578_v44 = vpop.f32.mrf.mxu0 }
 0x2c8   :  { %v350_v45 = vrot.slane %v343_v43, 4  ;;  %v357_v46 = vmul.f32 %v343_v43, %v343_v43 }
 0x2c9   :  { %v345_v47 = vpop.f32.mrf.mxu0 }
 0x2ca   :  { %v351_v48 = vadd.f32 %v350_v45, %v343_v43  ;;  %v358_v49 = vrot.slane %v357_v46, 4 }
 0x2cb   :  { %v579_v50 = vpop.f32.mrf.mxu0 }
 0x2cc   :  { %v352_v51 = vrot.slane %v351_v48, 2  ;;  %v359_v52 = vadd.f32 %v358_v49, %v357_v46 }
 0x2ce   :  { %v353_v53 = vadd.f32 %v352_v51, %v351_v48  ;;  %v360_v54 = vrot.slane %v359_v52, 2 }
 0x2d0   :  { %v354_v55 = vrot.slane %v353_v53, 1  ;;  %v361_v3 = vadd.f32 %v360_v54, %v359_v52 }
 0x2d2   :  { %v355_v56 = vadd.f32 %v354_v55, %v353_v53  ;;  %v362_v57 = vrot.slane %v361_v3, 1 }
 0x2d4   :  { %v356_v58 = vmul.f32 0.125, %v355_v56  ;;  %v363_v59 = vadd.f32 %v362_v57, %v361_v3 }
 0x2d6   :  { %v364_v60 = vmul.f32 0.125, %v363_v59  ;;  %v365_v61 = vmul.f32 %v356_v58, %v356_v58  ;;  %v368_v1 = vsub.f32 %v343_v43, %v356_v58 }
 0x2d8   :  { %v366_v62 = vsub.f32 %v364_v60, %v365_v61 }
 0x2da   :  { %v367_v63 = vmax.f32 %v366_v62, 0.0 }
 0x2dc   :  { %v369_v0 = vadd.f32 1e-05, %v367_v63 }
 0x2de   :  { %607 = vrsqrt.f32 %v369_v0 }
 0x2eb   :  { %v608_v2 = vpop.eup %607 }
 0x2ec   :  { %v371_v5 = vmul.f32 %v608_v2, %v368_v1 }
 0x2ee   :  { %v378_v7 = vmul.f32 %v481_v4, %v371_v5 }
 0x2f0   :  { %v385_v8 = vadd.f32 %v482_v6, %v378_v7 }
 0x2f2   :  { %v386_v9 = vmax.f32 %v385_v8, 0.0 }
 0x2f4   :  { %v404_v10 = vpack.c.bf16 %v386_v9, %v386_v9 }
 0x2f6   :  { %597 = vmatmul.mubr.bf16.vlgmr.msra.gmra.mxu1 %v404_v10 }
 0x3b6   :  { %v453_v12 = vpop.f32.mrf.mxu1 }
 0x3b7   :  { %v454_v13 = vadd.f32 %v483_v11, %v453_v12 }
 0x3b8   :  { %v598_v14 = vpop.f32.mrf.mxu1 }
 0x3b9   :  { %459 = vst [vmem:[#allocation2] sm:$0xff] %v454_v13 }
 0x3ba   :  { %v456_v15 = vpop.f32.mrf.mxu1 }
 0x3bb   :  { %620 = shalt.err (!%p617_p4)
}
 0x3bc   :  { %469 = dma.vmem_to_hbm [thread:$0]  %s467_s26, 128, %s997_s15, [#allocation3]   ;;  %v599_v16 = vpop.f32.mrf.mxu1 }
 0x3bd   :  { %629 = dma.done.wait [#allocation3], 128  }
 0x3be   :  { %630 = vsyncadd [#allocation3], 4294967168 }
 0x3bf   :  { %473 = vsyncpa [#allocation3], 1 }

</bundles_post_ra>
